<compile_context>
chip_gen: v6e
topology: v6e:2x2x1
jax: 0.10.0
libtpu: 0.0.40
codegen_flags: <defaults>
</compile_context>

<pallas_src>
import functools

import numpy as np

import jax
import jax.numpy as jnp
from jax.experimental import pallas as pl
from jax.experimental.pallas import tpu as pltpu


def _round_up(a, b):
    return (a + b - 1) // b * b


def _lane_pack_factor(hidden):
    """How many logical rows share one 128-lane vector row."""
    if hidden < 128 and 128 % hidden == 0:
        return 128 // hidden
    return 1


# ----------------------------------------------------------------------------
# Host-side parameter packing (pure layout plumbing, done once).
# ----------------------------------------------------------------------------
def pack_params(wqkv, bqkv, wout, bout, *, k_factor, in_channels, lane_pack):
    """wqkv: (C, 3kf, kf) torch Linear convention, bqkv: (C, 3kf),
    wout: (kf, kf), bout: (kf,).  Returns packed (w_all, b_all, w_fc, b_fc)."""
    kf, C, P = k_factor, in_channels, lane_pack
    H = C * kf
    scale = 1.0 / float(np.sqrt(kf))

    wqkv = np.asarray(wqkv, np.float32)
    bqkv = np.asarray(bqkv, np.float32)
    wout = np.asarray(wout, np.float32)
    bout = np.asarray(bout, np.float32)

    Wq, Wk, Wv = wqkv[:, :kf, :], wqkv[:, kf:2 * kf, :], wqkv[:, 2 * kf:, :]
    bq, bk, bv = bqkv[:, :kf], bqkv[:, kf:2 * kf], bqkv[:, 2 * kf:]

    # Fused projection column groups: [Q*scale | Krot_0 .. Krot_{C-1} | V].
    G = C + 2
    w_all = np.zeros((H, G * H), np.float32)
    b_all = np.zeros((G * H,), np.float32)
    vbase = (C + 1) * H
    for c in range(C):
        # scale folded into q weight + bias (saves one VPU multiply in-kernel)
        w_all[c * kf:(c + 1) * kf, c * kf:(c + 1) * kf] = scale * Wq[c].T
        b_all[c * kf:(c + 1) * kf] = scale * bq[c]
        w_all[c * kf:(c + 1) * kf, vbase + c * kf:vbase + (c + 1) * kf] = Wv[c].T
        b_all[vbase + c * kf:vbase + (c + 1) * kf] = bv[c]
    # Krot_j: column block l of group j produces k of channel (l+j) % C.
    for j in range(C):
        base = (1 + j) * H
        for l in range(C):
            m = (l + j) % C
            w_all[m * kf:(m + 1) * kf, base + l * kf:base + (l + 1) * kf] = Wk[m].T
            b_all[base + l * kf:base + (l + 1) * kf] = bk[m]

    # fc_out fused with the inverse channel rotation: one (H, H) matrix per j,
    # block (l, m=(l+j)%C) = wout.T, everything else zero.
    w_fc = np.zeros((C, H, H), np.float32)
    for j in range(C):
        for l in range(C):
            m = (l + j) % C
            w_fc[j, l * kf:(l + 1) * kf, m * kf:(m + 1) * kf] = wout.T
    b_fc = np.tile(bout, C)  # (H,)

    # Replicate block-diagonally so P consecutive positions share one
    # 128-lane row (fully lane-dense elementwise math + unmasked stores).
    HP = P * H
    w_all_p = np.zeros((HP, G * HP), np.float32)
    b_all_p = np.zeros((1, G * HP), np.float32)
    for g in range(G):
        for p in range(P):
            w_all_p[p * H:(p + 1) * H, g * HP + p * H:g * HP + (p + 1) * H] = \
                w_all[:, g * H:(g + 1) * H]
            b_all_p[0, g * HP + p * H:g * HP + (p + 1) * H] = b_all[g * H:(g + 1) * H]
    w_fc_p = np.zeros((C, HP, HP), np.float32)
    b_fc_p = np.zeros((1, HP), np.float32)
    for p in range(P):
        w_fc_p[:, p * H:(p + 1) * H, p * H:(p + 1) * H] = w_fc
        b_fc_p[0, p * H:(p + 1) * H] = b_fc

    return (jnp.asarray(w_all_p), jnp.asarray(b_all_p),
            jnp.asarray(w_fc_p), jnp.asarray(b_fc_p))


# ----------------------------------------------------------------------------
# Kernel
# ----------------------------------------------------------------------------
def _ccattn_kernel(x_ref, w_all_ref, b_all_ref, w_fc_ref, b_fc_ref, o_ref,
                   *, lane_width, in_channels):
    C = in_channels
    HP = lane_width

    x = x_ref[...]                                              # (TR, HP)

    # One fused MXU matmul: [scale*Q | K rotated by 0..C-1 | V], lane-dense.
    allp = jnp.dot(x, w_all_ref[...],
                   preferred_element_type=jnp.float32) + b_all_ref[...]
    q = allp[:, 0:HP]                                           # already scaled
    v = allp[:, (C + 1) * HP:(C + 2) * HP]

    # Criss-cross scores: s[j] block l holds q_l * k_{(l+j)%C} * scale.
    s = [q * allp[:, (1 + j) * HP:(2 + j) * HP] for j in range(C)]

    # Softmax over the channel axis (the j offset), fully lane-dense.
    mx = s[0]
    for j in range(1, C):
        mx = jnp.maximum(mx, s[j])
    z = None
    for j in range(C):
        s[j] = jnp.exp(s[j] - mx)       # overwrite scores -> bounded live set
        z = s[j] if z is None else z + s[j]

    vz = v * pl.reciprocal(z, approx=True)   # EUP reciprocal (~free slot)

    # fc_out + inverse channel rotation fused into C block-permuted matmuls
    # on the otherwise-idle MXU; single lane-dense full-tile store.
    out = b_fc_ref[...]
    for j in range(C):
        out = out + jnp.dot(vz * s[j], w_fc_ref[j],
                            preferred_element_type=jnp.float32)
    o_ref[...] = out.astype(o_ref.dtype)


# ----------------------------------------------------------------------------
# Wrapper
# ----------------------------------------------------------------------------
def criss_cross_attention(x, w_all_p, b_all_p, w_fc_p, b_fc_p,
                          *, k_factor, in_channels, lane_pack, tile_rows=256):
    """x: (N, L, C*kf) f32; packed params from pack_params.
    Returns (N, L, C*kf)."""
    N, L, H = x.shape
    C, P = in_channels, lane_pack
    assert H == C * k_factor
    HP = P * H

    R = N * L
    rows = _round_up(R, P) // P                 # 128-lane packed rows
    tr = min(tile_rows, _round_up(rows, 8))     # row tile (multiple of 8)
    rows_pad = _round_up(rows, tr)

    x2 = x.reshape(R, H)
    pad = rows_pad * P - R
    if pad:
        x2 = jnp.pad(x2, ((0, pad), (0, 0)))
    xp = x2.reshape(rows_pad, HP)

    kernel = functools.partial(_ccattn_kernel, lane_width=HP, in_channels=C)

    outp = pl.pallas_call(
        kernel,
        out_shape=jax.ShapeDtypeStruct((rows_pad, HP), x.dtype),
        grid_spec=pltpu.PrefetchScalarGridSpec(
            num_scalar_prefetch=0,
            grid=(rows_pad // tr,),
            in_specs=[
                pl.BlockSpec((tr, HP), lambda i: (i, 0)),
                pl.BlockSpec(w_all_p.shape, lambda i: (0, 0)),
                pl.BlockSpec(b_all_p.shape, lambda i: (0, 0)),
                pl.BlockSpec(w_fc_p.shape, lambda i: (0, 0, 0)),
                pl.BlockSpec(b_fc_p.shape, lambda i: (0, 0)),
            ],
            out_specs=pl.BlockSpec((tr, HP), lambda i: (i, 0)),
        ),
        compiler_params=pltpu.CompilerParams(
            dimension_semantics=("parallel",)),
    )(xp, w_all_p, b_all_p, w_fc_p, b_fc_p)

    out = outp.reshape(rows_pad * P, H)[:R]
    return out.reshape(N, L, H)


# ----------------------------------------------------------------------------
# Pure-JAX reference (transcription of the PyTorch forward).
# ----------------------------------------------------------------------------
def reference(x, wqkv, bqkv, wout, bout, k_factor, in_channels):
    N, L, _ = x.shape
    kf, C = k_factor, in_channels
    with jax.default_matmul_precision("highest"):
        chunks = jnp.split(x, C, axis=2)
        qs, ks, vs = [], [], []
        for c in range(C):
            qkv = chunks[c] @ wqkv[c].T + bqkv[c]
            q, k, v = jnp.split(qkv, 3, axis=-1)
            qs.append(q)
            ks.append(k)
            vs.append(v)
        Q = jnp.stack(qs, -1)[..., None]        # (N, L, kf, C, 1)
        K = jnp.stack(ks, -1)[..., None, :]     # (N, L, kf, 1, C)
        V = jnp.stack(vs, -1)                   # (N, L, kf, C)
        scores = jnp.matmul(Q, K) / (kf ** 0.5)
        attn = jax.nn.softmax(scores, axis=-1)
        ctx = jnp.einsum('ijklm,ijkl->ijkm', attn, V)
        ctx = jnp.swapaxes(ctx, -2, -1)         # (N, L, C, kf)
        out = ctx @ wout.T + bout
    return out.reshape(N, L, C * kf)


if __name__ == "__main__":
    K_FACTOR = 16
    NUM_HEADS = 4        # stored by the module but unused by forward()
    IN_CHANNELS = 4
    N, L = 2, 8
    H = K_FACTOR * IN_CHANNELS

    key = jax.random.PRNGKey(0)
    kx, kw, kb, kw2, kb2 = jax.random.split(key, 5)

    x = jax.random.normal(kx, (N, L, H), dtype=jnp.float32)

    # Deterministic synthetic parameters (PyTorch Linear convention: (out, in)).
    wqkv = 0.1 * jax.random.normal(
        kw, (IN_CHANNELS, 3 * K_FACTOR, K_FACTOR), dtype=jnp.float32)
    bqkv = 0.1 * jax.random.normal(
        kb, (IN_CHANNELS, 3 * K_FACTOR), dtype=jnp.float32)
    wout = 0.1 * jax.random.normal(
        kw2, (K_FACTOR, K_FACTOR), dtype=jnp.float32)
    bout = 0.1 * jax.random.normal(kb2, (K_FACTOR,), dtype=jnp.float32)

    P = _lane_pack_factor(H)   # 2 positions per 128-lane row for H = 64
    packed = pack_params(wqkv, bqkv, wout, bout,
                         k_factor=K_FACTOR, in_channels=IN_CHANNELS,
                         lane_pack=P)

    out = criss_cross_attention(
        x, *packed, k_factor=K_FACTOR, in_channels=IN_CHANNELS, lane_pack=P)
    out = jax.block_until_ready(out)

    ref = reference(x, wqkv, bqkv, wout, bout, K_FACTOR, IN_CHANNELS)

    # Tolerance accounts for MXU default f32 matmul precision and the
    # approximate (EUP) reciprocal in the softmax denominator; a semantic bug
    # would produce O(0.1+) errors.
    if not jnp.allclose(out, ref, rtol=1e-2, atol=1e-2):
        max_err = jnp.max(jnp.abs(out - ref))
        raise AssertionError(
            f"Pallas kernel does not match reference (max abs err = {max_err})")

    print("KERNEL_OK")
</pallas_src>

<mosaic_0001>
module attributes {stable_mosaic.version = 11 : i64} {
  func.func @_ccattn_kernel(%arg0: i32, %arg1: memref<8x128xf32, #tpu.memory_space<vmem>>, %arg2: memref<128x768xf32, #tpu.memory_space<vmem>>, %arg3: memref<1x768xf32, #tpu.memory_space<vmem>>, %arg4: memref<4x128x128xf32, #tpu.memory_space<vmem>>, %arg5: memref<1x128xf32, #tpu.memory_space<vmem>>, %arg6: memref<8x128xf32, #tpu.memory_space<vmem>>) attributes {dimension_semantics = [#tpu.dimension_semantics<parallel>], iteration_bounds = array<i64: 1>, scalar_prefetch = 0 : i64, scratch_operands = 0 : i64, tpu.core_type = #tpu.core_type<tc>, window_params = [{transform_indices = @transform_0, window_bounds = array<i64: 8, 128>}, {pipeline_mode = #tpu.pipeline_mode<synchronous>, transform_indices = @transform_1, window_bounds = array<i64: 128, 768>}, {pipeline_mode = #tpu.pipeline_mode<synchronous>, transform_indices = @transform_2, window_bounds = array<i64: 1, 768>}, {pipeline_mode = #tpu.pipeline_mode<synchronous>, transform_indices = @transform_3, window_bounds = array<i64: 4, 128, 128>}, {pipeline_mode = #tpu.pipeline_mode<synchronous>, transform_indices = @transform_4, window_bounds = array<i64: 1, 128>}, {transform_indices = @transform_5, window_bounds = array<i64: 8, 128>}]} {
    %c0 = arith.constant 0 : index
    %c0_0 = arith.constant 0 : index
    %0 = vector.load %arg1[%c0, %c0_0] : memref<8x128xf32, #tpu.memory_space<vmem>>, vector<8x128xf32>
    %c0_1 = arith.constant 0 : index
    %c0_2 = arith.constant 0 : index
    %1 = vector.load %arg2[%c0_1, %c0_2] : memref<128x768xf32, #tpu.memory_space<vmem>>, vector<128x768xf32>
    %cst = arith.constant dense<0.000000e+00> : vector<8x768xf32>
    %2 = tpu.matmul %0, %1, %cst {dimension_numbers = #tpu.dot_dimension_numbers<[1], [0], [0], [1], [0, 0, 1, 1], [], []>} : vector<8x128xf32>, vector<128x768xf32>, vector<8x768xf32> -> vector<8x768xf32>
    %c0_3 = arith.constant 0 : index
    %c0_4 = arith.constant 0 : index
    %3 = vector.load %arg3[%c0_3, %c0_4] : memref<1x768xf32, #tpu.memory_space<vmem>>, vector<1x768xf32>
    %4 = vector.broadcast %3 : vector<1x768xf32> to vector<8x768xf32>
    %5 = arith.addf %2, %4 : vector<8x768xf32>
    %6 = vector.extract_strided_slice %5 {offsets = [0, 0], sizes = [8, 128], strides = [1, 1]} : vector<8x768xf32> to vector<8x128xf32>
    %7 = vector.extract_strided_slice %5 {offsets = [0, 640], sizes = [8, 128], strides = [1, 1]} : vector<8x768xf32> to vector<8x128xf32>
    %8 = vector.extract_strided_slice %5 {offsets = [0, 128], sizes = [8, 128], strides = [1, 1]} : vector<8x768xf32> to vector<8x128xf32>
    %9 = arith.mulf %6, %8 : vector<8x128xf32>
    %10 = vector.extract_strided_slice %5 {offsets = [0, 256], sizes = [8, 128], strides = [1, 1]} : vector<8x768xf32> to vector<8x128xf32>
    %11 = arith.mulf %6, %10 : vector<8x128xf32>
    %12 = vector.extract_strided_slice %5 {offsets = [0, 384], sizes = [8, 128], strides = [1, 1]} : vector<8x768xf32> to vector<8x128xf32>
    %13 = arith.mulf %6, %12 : vector<8x128xf32>
    %14 = vector.extract_strided_slice %5 {offsets = [0, 512], sizes = [8, 128], strides = [1, 1]} : vector<8x768xf32> to vector<8x128xf32>
    %15 = arith.mulf %6, %14 : vector<8x128xf32>
    %16 = arith.maximumf %9, %11 : vector<8x128xf32>
    %17 = arith.maximumf %16, %13 : vector<8x128xf32>
    %18 = arith.maximumf %17, %15 : vector<8x128xf32>
    %19 = arith.subf %9, %18 : vector<8x128xf32>
    %20 = math.exp %19 : vector<8x128xf32>
    %21 = arith.subf %11, %18 : vector<8x128xf32>
    %22 = math.exp %21 : vector<8x128xf32>
    %23 = arith.addf %20, %22 : vector<8x128xf32>
    %24 = arith.subf %13, %18 : vector<8x128xf32>
    %25 = math.exp %24 : vector<8x128xf32>
    %26 = arith.addf %23, %25 : vector<8x128xf32>
    %27 = arith.subf %15, %18 : vector<8x128xf32>
    %28 = math.exp %27 : vector<8x128xf32>
    %29 = arith.addf %26, %28 : vector<8x128xf32>
    %30 = tpu.reciprocal %29 {approx = true} : vector<8x128xf32> -> vector<8x128xf32>
    %31 = arith.mulf %7, %30 : vector<8x128xf32>
    %c0_5 = arith.constant 0 : index
    %c0_6 = arith.constant 0 : index
    %32 = vector.load %arg5[%c0_5, %c0_6] : memref<1x128xf32, #tpu.memory_space<vmem>>, vector<1x128xf32>
    %33 = arith.mulf %31, %20 : vector<8x128xf32>
    %c0_7 = arith.constant 0 : index
    %c0_8 = arith.constant 0 : index
    %c0_9 = arith.constant 0 : index
    %34 = vector.load %arg4[%c0_7, %c0_8, %c0_9] : memref<4x128x128xf32, #tpu.memory_space<vmem>>, vector<1x128x128xf32>
    %35 = vector.shape_cast %34 : vector<1x128x128xf32> to vector<128x128xf32>
    %cst_10 = arith.constant dense<0.000000e+00> : vector<8x128xf32>
    %36 = tpu.matmul %33, %35, %cst_10 {dimension_numbers = #tpu.dot_dimension_numbers<[1], [0], [0], [1], [0, 0, 1, 1], [], []>} : vector<8x128xf32>, vector<128x128xf32>, vector<8x128xf32> -> vector<8x128xf32>
    %37 = vector.broadcast %32 : vector<1x128xf32> to vector<8x128xf32>
    %38 = arith.addf %37, %36 : vector<8x128xf32>
    %39 = arith.mulf %31, %22 : vector<8x128xf32>
    %c1 = arith.constant 1 : index
    %c0_11 = arith.constant 0 : index
    %c0_12 = arith.constant 0 : index
    %40 = vector.load %arg4[%c1, %c0_11, %c0_12] : memref<4x128x128xf32, #tpu.memory_space<vmem>>, vector<1x128x128xf32>
    %41 = vector.shape_cast %40 : vector<1x128x128xf32> to vector<128x128xf32>
    %cst_13 = arith.constant dense<0.000000e+00> : vector<8x128xf32>
    %42 = tpu.matmul %39, %41, %cst_13 {dimension_numbers = #tpu.dot_dimension_numbers<[1], [0], [0], [1], [0, 0, 1, 1], [], []>} : vector<8x128xf32>, vector<128x128xf32>, vector<8x128xf32> -> vector<8x128xf32>
    %43 = arith.addf %38, %42 : vector<8x128xf32>
    %44 = arith.mulf %31, %25 : vector<8x128xf32>
    %c2 = arith.constant 2 : index
    %c0_14 = arith.constant 0 : index
    %c0_15 = arith.constant 0 : index
    %45 = vector.load %arg4[%c2, %c0_14, %c0_15] : memref<4x128x128xf32, #tpu.memory_space<vmem>>, vector<1x128x128xf32>
    %46 = vector.shape_cast %45 : vector<1x128x128xf32> to vector<128x128xf32>
    %cst_16 = arith.constant dense<0.000000e+00> : vector<8x128xf32>
    %47 = tpu.matmul %44, %46, %cst_16 {dimension_numbers = #tpu.dot_dimension_numbers<[1], [0], [0], [1], [0, 0, 1, 1], [], []>} : vector<8x128xf32>, vector<128x128xf32>, vector<8x128xf32> -> vector<8x128xf32>
    %48 = arith.addf %43, %47 : vector<8x128xf32>
    %49 = arith.mulf %31, %28 : vector<8x128xf32>
    %c3 = arith.constant 3 : index
    %c0_17 = arith.constant 0 : index
    %c0_18 = arith.constant 0 : index
    %50 = vector.load %arg4[%c3, %c0_17, %c0_18] : memref<4x128x128xf32, #tpu.memory_space<vmem>>, vector<1x128x128xf32>
    %51 = vector.shape_cast %50 : vector<1x128x128xf32> to vector<128x128xf32>
    %cst_19 = arith.constant dense<0.000000e+00> : vector<8x128xf32>
    %52 = tpu.matmul %49, %51, %cst_19 {dimension_numbers = #tpu.dot_dimension_numbers<[1], [0], [0], [1], [0, 0, 1, 1], [], []>} : vector<8x128xf32>, vector<128x128xf32>, vector<8x128xf32> -> vector<8x128xf32>
    %53 = arith.addf %48, %52 : vector<8x128xf32>
    %c0_20 = arith.constant 0 : index
    %c0_21 = arith.constant 0 : index
    %54 = vector.load %arg6[%c0_20, %c0_21] : memref<8x128xf32, #tpu.memory_space<vmem>>, vector<8x128xf32>
    tpu.vector_store %arg6[%c0_20, %c0_21], %53 {strides = array<i32>} : memref<8x128xf32, #tpu.memory_space<vmem>>, vector<8x128xf32>,
    return
  }
  func.func @transform_0(%arg0: i32) -> (i32, i32) {
    %c0_i32 = arith.constant 0 : i32
    %c0_i32_0 = arith.constant 0 : i32
    return %arg0, %c0_i32 : i32, i32
  }
  func.func @transform_1(%arg0: i32) -> (i32, i32) {
    %c0_i32 = arith.constant 0 : i32
    %c0_i32_0 = arith.constant 0 : i32
    %c0_i32_1 = arith.constant 0 : i32
    return %c0_i32, %c0_i32_0 : i32, i32
  }
  func.func @transform_2(%arg0: i32) -> (i32, i32) {
    %c0_i32 = arith.constant 0 : i32
    %c0_i32_0 = arith.constant 0 : i32
    %c0_i32_1 = arith.constant 0 : i32
    return %c0_i32, %c0_i32_0 : i32, i32
  }
  func.func @transform_3(%arg0: i32) -> (i32, i32, i32) {
    %c0_i32 = arith.constant 0 : i32
    %c0_i32_0 = arith.constant 0 : i32
    %c0_i32_1 = arith.constant 0 : i32
    %c0_i32_2 = arith.constant 0 : i32
    return %c0_i32, %c0_i32_0, %c0_i32_1 : i32, i32, i32
  }
  func.func @transform_4(%arg0: i32) -> (i32, i32) {
    %c0_i32 = arith.constant 0 : i32
    %c0_i32_0 = arith.constant 0 : i32
    %c0_i32_1 = arith.constant 0 : i32
    return %c0_i32, %c0_i32_0 : i32, i32
  }
  func.func @transform_5(%arg0: i32) -> (i32, i32) {
    %c0_i32 = arith.constant 0 : i32
    %c0_i32_0 = arith.constant 0 : i32
    return %arg0, %c0_i32 : i32, i32
  }
}

</mosaic_0001>

<bundles_post_ra>
// kernel: tpu_custom_call.1
= control target key start
LH: loop header
LB: loop body
LE: loop exit
PB: predicated region body
PF: predicated region fallthrough
CT: control target
= control target key end

     0   :  { %10 = vsyncpa [#allocation3], 0  ;;  %s1309_s0 = inlined_call_operand.hbm [shape: f32[8,128], index: 0, kind: input, shape index: {}]   ;;  %s1310_s1 = inlined_call_operand.hbm [shape: f32[128,768], index: 1, kind: input, shape index: {}]   ;;  %s1311_s2 = inlined_call_operand.hbm [shape: f32[1,768], index: 2, kind: input, shape index: {}]   ;;  %s1312_s3 = inlined_call_operand.hbm [shape: f32[4,128,128], index: 3, kind: input, shape index: {}]   ;;  %s1313_s4 = inlined_call_operand.vmem [shape: f32[1,128], index: 4, kind: input, shape index: {}]   ;;  %s1314_s5 = inlined_call_operand.hbm [shape: f32[8,128], index: 5, kind: output, shape index: {}]  }
   0x1   :  { %11 = vsyncpa [#allocation6], 0 }
   0x2   :  { %12 = vsyncpa [#allocation9], 0 }
   0x3   :  { %13 = vsyncpa [#allocation4], 0  ;;  %s1156_s18 = smov [#allocation5]  }
   0x4   :  { %s29_s19 = sshll.u32 %s1156_s18, 4  ;;  %s30_s19 = int_to_ptr.vmem [resolvable:$true] %s29_s19 }
   0x5   :  { %s1056_s20 = scalar_lea.vmem %s30_s19, 12288  ;;  %p1061_p1 = scmp.lt.s32.totalorder %s30_s19, %s30_s19 }
   0x6   :  { %p1057_p0 = scmp.ne.s32.totalorder %s30_s19, %s1056_s20  ;;  %p1062_p2 = scmp.lt.s32.totalorder %s1056_s20, %s1056_s20 }
   0x8   :  { %p1063_p3 = por %p1062_p2, %p1061_p1 }
   0xa   :  { %p1064_p4 = pnand %p1063_p3, %p1057_p0 }
   0xc   :  { %1067 = shalt.err (!%p1064_p4)
}
   0xd   :  { %s1157_s21 = smov 768   ;;  %s1158_s22 = smov 48  }
   0xe   :  { %35 = dma.hbm_to_vmem [thread:$0]  %s1310_s1, 12288, %s30_s19, [#allocation6], %s1157_s21, %s1157_s21, %s1158_s22  }
   0xf   :  { %s1159_s25 = smov [#allocation2]   ;;  %s1160_s27 = smov [#allocation7]  }
  0x10   :  { %s20_s26 = sshll.u32 %s1159_s25, 4  ;;  %s42_s28 = sshll.u32 %s1160_s27, 4  ;;  %s21_s26 = int_to_ptr.vmem [resolvable:$true] %s20_s26  ;;  %s43_s28 = int_to_ptr.vmem [resolvable:$true] %s42_s28 }
  0x11   :  { %s1076_s29 = scalar_lea.vmem %s21_s26, 128  ;;  %p1081_p6 = scmp.lt.s32.totalorder %s21_s26, %s21_s26 }
  0x12   :  { %p1077_p5 = scmp.ne.s32.totalorder %s21_s26, %s1076_s29  ;;  %p1082_p7 = scmp.lt.s32.totalorder %s1076_s29, %s1076_s29 }
  0x14   :  { %p1083_p8 = por %p1082_p7, %p1081_p6 }
  0x16   :  { %p1084_p9 = pnand %p1083_p8, %p1077_p5 }
  0x18   :  { %1087 = shalt.err (!%p1084_p9)
}
  0x19   :  { %23 = dma.hbm_to_vmem [thread:$0]  %s1309_s0, 128, %s21_s26, [#allocation3]  }
  0x1a   :  { %s1096_s7 = scalar_lea.vmem %s43_s28, 96  ;;  %p1101_p11 = scmp.lt.s32.totalorder %s43_s28, %s43_s28 }
  0x1b   :  { %p1097_p10 = scmp.ne.s32.totalorder %s43_s28, %s1096_s7  ;;  %p1102_p12 = scmp.lt.s32.totalorder %s1096_s7, %s1096_s7 }
  0x1d   :  { %p1103_p13 = por %p1102_p12, %p1101_p11 }
  0x1f   :  { %p1104_p0 = pnand %p1103_p13, %p1097_p10 }
  0x21   :  { %1107 = shalt.err (!%p1104_p0)
}
  0x22   :  { %45 = dma.hbm_to_vmem [thread:$0]  %s1311_s2, 96, %s43_s28, [#allocation6]  }
  0x23   :  { %s1161_s9 = smov [#allocation8]  }
  0x24   :  { %s51_s10 = sshll.u32 %s1161_s9, 4  ;;  %s52_s10 = int_to_ptr.vmem [resolvable:$true] %s51_s10 }
  0x25   :  { %s1116_s11 = scalar_lea.vmem %s52_s10, 8192  ;;  %p1121_p2 = scmp.lt.s32.totalorder %s52_s10, %s52_s10 }
  0x26   :  { %p1117_p1 = scmp.ne.s32.totalorder %s52_s10, %s1116_s11  ;;  %p1122_p3 = scmp.lt.s32.totalorder %s1116_s11, %s1116_s11 }
  0x28   :  { %p1123_p4 = por %p1122_p3, %p1121_p2 }
  0x2a   :  { %p1124_p5 = pnand %p1123_p4, %p1117_p1 }
  0x2c   :  { %1127 = shalt.err (!%p1124_p5)
}
  0x2d   :  { %s1162_s0 = smov 128   ;;  %s1163_s12 = smov 8  }
  0x2e   :  { %57 = dma.hbm_to_vmem [thread:$0]  %s1312_s3, 8192, %s52_s10, [#allocation9], %s1162_s0, %s1162_s0, %s1163_s12  }
  0x2f   :  { %1148 = dma.done.wait [#allocation3], 128  }
  0x30   :  { %1149 = vsyncadd [#allocation3], 4294967168 }
  0x31   :  { %1150 = dma.done.wait [#allocation6], 12384  }
  0x32   :  { %1151 = vsyncadd [#allocation6], 4294954912 }
  0x33   :  { %1152 = dma.done.wait [#allocation9], 8192  }
  0x34   :  { %1153 = vsyncadd [#allocation9], 4294959104  ;;  %v1164_v0 = vmov 0.0   ;;  %v164_v1 = vld [vmem:[#allocation5 + $0x2d8] sm:$0xff]  ;;  %v166_v2 = vld [vmem:[#allocation5 + $0x2e8] sm:$0xff]  ;;  %vm1165_vm0 = vmmov 0  }
  0x35   :  { %265 = vmatprep.mubr.f32.mxu0 %v1164_v0  ;;  %336 = vmatprep.mubr.f32.mxu1 %v1164_v0  ;;  %v163_v3 = vld [vmem:[#allocation5 + $0x2d0] sm:$0xff]  ;;  %v165_v4 = vld [vmem:[#allocation5 + $0x2e0] sm:$0xff]  ;;  %v158_v5 = vld [vmem:[#allocation5 + $0x2a8] sm:$0xff]  ;;  %s1166_s15 = smov [#allocation10]  }
  0x36   :  { %201 = vmatprep.subr.mxu0 %v164_v1  ;;  %272 = vmatprep.subr.mxu1 %v166_v2  ;;  %v160_v6 = vld [vmem:[#allocation5 + $0x2b8] sm:$0xff]  ;;  %v157_v7 = vld [vmem:[#allocation5 + $0x2a0] sm:$0xff]  ;;  %v159_v8 = vld [vmem:[#allocation5 + $0x2b0] sm:$0xff]  ;;  %s807_s16 = sshll.u32 %s1166_s15, 4  ;;  %s808_s16 = int_to_ptr.vmem [resolvable:$true] %s807_s16 }
  0x37   :  { %202 = vmatpush1.msra.mxu0 %v163_v3  ;;  %273 = vmatpush1.msra.mxu1 %v165_v4  ;;  %v152_v9 = vld [vmem:[#allocation5 + $0x278] sm:$0xff]  ;;  %v154_v10 = vld [vmem:[#allocation5 + $0x288] sm:$0xff]  ;;  %v151_v11 = vld [vmem:[#allocation5 + $0x270] sm:$0xff]  ;;  %s1128_s17 = scalar_lea.vmem %s808_s16, 128  ;;  %p1133_p7 = scmp.lt.s32.totalorder %s808_s16, %s808_s16 }
  0x38   :  { %203 = vmatprep.subr.mxu0 %v158_v5  ;;  %274 = vmatprep.subr.mxu1 %v160_v6  ;;  %v153_v12 = vld [vmem:[#allocation5 + $0x280] sm:$0xff]  ;;  %v146_v13 = vld [vmem:[#allocation5 + $0x248] sm:$0xff]  ;;  %v148_v14 = vld [vmem:[#allocation5 + $0x258] sm:$0xff]  ;;  %p1129_p6 = scmp.ne.s32.totalorder %s808_s16, %s1128_s17  ;;  %p1134_p8 = scmp.lt.s32.totalorder %s1128_s17, %s1128_s17 }
  0x39   :  { %204 = vmatpush1.msra.mxu0 %v157_v7  ;;  %275 = vmatpush1.msra.mxu1 %v159_v8  ;;  %v145_v15 = vld [vmem:[#allocation5 + $0x240] sm:$0xff]  ;;  %v147_v16 = vld [vmem:[#allocation5 + $0x250] sm:$0xff]  ;;  %v140_v17 = vld [vmem:[#allocation5 + $0x218] sm:$0xff] }
  0x3a   :  { %205 = vmatprep.subr.mxu0 %v152_v9  ;;  %276 = vmatprep.subr.mxu1 %v154_v10  ;;  %v142_v18 = vld [vmem:[#allocation5 + $0x228] sm:$0xff]  ;;  %v139_v19 = vld [vmem:[#allocation5 + $0x210] sm:$0xff]  ;;  %v141_v20 = vld [vmem:[#allocation5 + $0x220] sm:$0xff]  ;;  %p1135_p9 = por %p1134_p8, %p1133_p7 }
  0x3b   :  { %206 = vmatpush1.msra.mxu0 %v151_v11  ;;  %277 = vmatpush1.msra.mxu1 %v153_v12  ;;  %v134_v21 = vld [vmem:[#allocation5 + $0x1e8] sm:$0xff]  ;;  %v136_v22 = vld [vmem:[#allocation5 + $0x1f8] sm:$0xff]  ;;  %v133_v23 = vld [vmem:[#allocation5 + $0x1e0] sm:$0xff] }
  0x3c   :  { %207 = vmatprep.subr.mxu0 %v146_v13  ;;  %278 = vmatprep.subr.mxu1 %v148_v14  ;;  %v135_v24 = vld [vmem:[#allocation5 + $0x1f0] sm:$0xff]  ;;  %v128_v25 = vld [vmem:[#allocation5 + $0x1b8] sm:$0xff]  ;;  %v130_v26 = vld [vmem:[#allocation5 + $0x1c8] sm:$0xff]  ;;  %p1136_p10 = pnand %p1135_p9, %p1129_p6 }
  0x3d   :  { %208 = vmatpush1.msra.mxu0 %v145_v15  ;;  %279 = vmatpush1.msra.mxu1 %v147_v16  ;;  %v127_v27 = vld [vmem:[#allocation5 + $0x1b0] sm:$0xff]  ;;  %v129_v28 = vld [vmem:[#allocation5 + $0x1c0] sm:$0xff]  ;;  %v122_v29 = vld [vmem:[#allocation5 + $0x188] sm:$0xff] }
  0x3e   :  { %209 = vmatprep.subr.mxu0 %v140_v17  ;;  %280 = vmatprep.subr.mxu1 %v142_v18  ;;  %v124_v30 = vld [vmem:[#allocation5 + $0x198] sm:$0xff]  ;;  %v121_v31 = vld [vmem:[#allocation5 + $0x180] sm:$0xff]  ;;  %v123_v32 = vld [vmem:[#allocation5 + $0x190] sm:$0xff] }
  0x3f   :  { %210 = vmatpush1.msra.mxu0 %v139_v19  ;;  %281 = vmatpush1.msra.mxu1 %v141_v20  ;;  %v116_v33 = vld [vmem:[#allocation5 + $0x158] sm:$0xff]  ;;  %v118_v34 = vld [vmem:[#allocation5 + $0x168] sm:$0xff]  ;;  %v115_v35 = vld [vmem:[#allocation5 + $0x150] sm:$0xff] }
  0x40   :  { %211 = vmatprep.subr.mxu0 %v134_v21  ;;  %282 = vmatprep.subr.mxu1 %v136_v22  ;;  %v117_v36 = vld [vmem:[#allocation5 + $0x160] sm:$0xff]  ;;  %v110_v37 = vld [vmem:[#allocation5 + $0x128] sm:$0xff]  ;;  %v112_v38 = vld [vmem:[#allocation5 + $0x138] sm:$0xff] }
  0x41   :  { %212 = vmatpush1.msra.mxu0 %v133_v23  ;;  %283 = vmatpush1.msra.mxu1 %v135_v24  ;;  %v109_v39 = vld [vmem:[#allocation5 + $0x120] sm:$0xff]  ;;  %v111_v40 = vld [vmem:[#allocation5 + $0x130] sm:$0xff]  ;;  %v104_v41 = vld [vmem:[#allocation5 + $0xf8] sm:$0xff] }
  0x42   :  { %213 = vmatprep.subr.mxu0 %v128_v25  ;;  %284 = vmatprep.subr.mxu1 %v130_v26  ;;  %v106_v42 = vld [vmem:[#allocation5 + $0x108] sm:$0xff]  ;;  %v103_v43 = vld [vmem:[#allocation5 + $0xf0] sm:$0xff]  ;;  %v105_v44 = vld [vmem:[#allocation5 + $0x100] sm:$0xff] }
  0x43   :  { %214 = vmatpush1.msra.mxu0 %v127_v27  ;;  %285 = vmatpush1.msra.mxu1 %v129_v28  ;;  %v98_v45 = vld [vmem:[#allocation5 + $0xc8] sm:$0xff]  ;;  %v100_v46 = vld [vmem:[#allocation5 + $0xd8] sm:$0xff]  ;;  %v97_v47 = vld [vmem:[#allocation5 + $0xc0] sm:$0xff] }
  0x44   :  { %215 = vmatprep.subr.mxu0 %v122_v29  ;;  %286 = vmatprep.subr.mxu1 %v124_v30  ;;  %v99_v48 = vld [vmem:[#allocation5 + $0xd0] sm:$0xff]  ;;  %v92_v49 = vld [vmem:[#allocation5 + $0x98] sm:$0xff]  ;;  %v94_v50 = vld [vmem:[#allocation5 + $0xa8] sm:$0xff] }
  0x45   :  { %216 = vmatpush1.msra.mxu0 %v121_v31  ;;  %287 = vmatpush1.msra.mxu1 %v123_v32  ;;  %v91_v51 = vld [vmem:[#allocation5 + $0x90] sm:$0xff]  ;;  %v93_v52 = vld [vmem:[#allocation5 + $0xa0] sm:$0xff]  ;;  %v86_v53 = vld [vmem:[#allocation5 + $0x68] sm:$0xff] }
  0x46   :  { %217 = vmatprep.subr.mxu0 %v116_v33  ;;  %288 = vmatprep.subr.mxu1 %v118_v34  ;;  %v88_v54 = vld [vmem:[#allocation5 + $0x78] sm:$0xff]  ;;  %v85_v55 = vld [vmem:[#allocation5 + $0x60] sm:$0xff]  ;;  %v87_v56 = vld [vmem:[#allocation5 + $0x70] sm:$0xff] }
  0x47   :  { %218 = vmatpush1.msra.mxu0 %v115_v35  ;;  %289 = vmatpush1.msra.mxu1 %v117_v36  ;;  %v80_v57 = vld [vmem:[#allocation5 + $0x38] sm:$0xff]  ;;  %v82_v58 = vld [vmem:[#allocation5 + $0x48] sm:$0xff]  ;;  %v79_v59 = vld [vmem:[#allocation5 + $0x30] sm:$0xff] }
  0x48   :  { %219 = vmatprep.subr.mxu0 %v110_v37  ;;  %290 = vmatprep.subr.mxu1 %v112_v38  ;;  %v81_v60 = vld [vmem:[#allocation5 + $0x40] sm:$0xff]  ;;  %v74_v61 = vld [vmem:[#allocation5 + $0x8] sm:$0xff]  ;;  %v76_v62 = vld [vmem:[#allocation5 + $0x18] sm:$0xff] }
  0x49   :  { %220 = vmatpush1.msra.mxu0 %v109_v39  ;;  %291 = vmatpush1.msra.mxu1 %v111_v40  ;;  %v73_v63 = vld [vmem:[#allocation5] sm:$0xff]  ;;  %v75_v1 = vld [vmem:[#allocation5 + $0x10] sm:$0xff]  ;;  %v1211_v2 = vld [vmem:[#allocation2] sm:$0xff] }
  0x4a   :  { %221 = vmatprep.subr.mxu0 %v104_v41  ;;  %292 = vmatprep.subr.mxu1 %v106_v42  ;;  %v168_v3 = vld [vmem:[#allocation5 + $0x2f8] sm:$0xff]  ;;  %v167_v4 = vld [vmem:[#allocation5 + $0x2f0] sm:$0xff]  ;;  %v162_v5 = vld [vmem:[#allocation5 + $0x2c8] sm:$0xff] }
  0x4b   :  { %222 = vmatpush1.msra.mxu0 %v103_v43  ;;  %293 = vmatpush1.msra.mxu1 %v105_v44  ;;  %v161_v6 = vld [vmem:[#allocation5 + $0x2c0] sm:$0xff]  ;;  %v156_v7 = vld [vmem:[#allocation5 + $0x298] sm:$0xff]  ;;  %v155_v8 = vld [vmem:[#allocation5 + $0x290] sm:$0xff] }
  0x4c   :  { %223 = vmatprep.subr.mxu0 %v98_v45  ;;  %294 = vmatprep.subr.mxu1 %v100_v46  ;;  %v150_v9 = vld [vmem:[#allocation5 + $0x268] sm:$0xff]  ;;  %v149_v10 = vld [vmem:[#allocation5 + $0x260] sm:$0xff]  ;;  %v144_v11 = vld [vmem:[#allocation5 + $0x238] sm:$0xff] }
  0x4d   :  { %224 = vmatpush1.msra.mxu0 %v97_v47  ;;  %295 = vmatpush1.msra.mxu1 %v99_v48  ;;  %v143_v12 = vld [vmem:[#allocation5 + $0x230] sm:$0xff]  ;;  %v138_v13 = vld [vmem:[#allocation5 + $0x208] sm:$0xff]  ;;  %v137_v14 = vld [vmem:[#allocation5 + $0x200] sm:$0xff] }
  0x4e   :  { %225 = vmatprep.subr.mxu0 %v92_v49  ;;  %296 = vmatprep.subr.mxu1 %v94_v50  ;;  %v132_v15 = vld [vmem:[#allocation5 + $0x1d8] sm:$0xff]  ;;  %v131_v16 = vld [vmem:[#allocation5 + $0x1d0] sm:$0xff]  ;;  %v126_v17 = vld [vmem:[#allocation5 + $0x1a8] sm:$0xff] }
  0x4f   :  { %226 = vmatpush1.msra.mxu0 %v91_v51  ;;  %297 = vmatpush1.msra.mxu1 %v93_v52  ;;  %v125_v18 = vld [vmem:[#allocation5 + $0x1a0] sm:$0xff]  ;;  %v120_v19 = vld [vmem:[#allocation5 + $0x178] sm:$0xff]  ;;  %v119_v20 = vld [vmem:[#allocation5 + $0x170] sm:$0xff] }
  0x50   :  { %227 = vmatprep.subr.mxu0 %v86_v53  ;;  %298 = vmatprep.subr.mxu1 %v88_v54  ;;  %v114_v21 = vld [vmem:[#allocation5 + $0x148] sm:$0xff]  ;;  %v113_v22 = vld [vmem:[#allocation5 + $0x140] sm:$0xff]  ;;  %v108_v23 = vld [vmem:[#allocation5 + $0x118] sm:$0xff] }
  0x51   :  { %228 = vmatpush1.msra.mxu0 %v85_v55  ;;  %299 = vmatpush1.msra.mxu1 %v87_v56  ;;  %v107_v24 = vld [vmem:[#allocation5 + $0x110] sm:$0xff]  ;;  %v102_v25 = vld [vmem:[#allocation5 + $0xe8] sm:$0xff]  ;;  %v101_v26 = vld [vmem:[#allocation5 + $0xe0] sm:$0xff] }
  0x52   :  { %229 = vmatprep.subr.mxu0 %v80_v57  ;;  %300 = vmatprep.subr.mxu1 %v82_v58  ;;  %v96_v27 = vld [vmem:[#allocation5 + $0xb8] sm:$0xff]  ;;  %v95_v28 = vld [vmem:[#allocation5 + $0xb0] sm:$0xff]  ;;  %v90_v29 = vld [vmem:[#allocation5 + $0x88] sm:$0xff] }
  0x53   :  { %230 = vmatpush1.msra.mxu0 %v79_v59  ;;  %301 = vmatpush1.msra.mxu1 %v81_v60  ;;  %v89_v30 = vld [vmem:[#allocation5 + $0x80] sm:$0xff]  ;;  %v84_v31 = vld [vmem:[#allocation5 + $0x58] sm:$0xff]  ;;  %v83_v32 = vld [vmem:[#allocation5 + $0x50] sm:$0xff] }
  0x54   :  { %231 = vmatprep.subr.mxu0 %v74_v61  ;;  %302 = vmatprep.subr.mxu1 %v76_v62  ;;  %v78_v33 = vld [vmem:[#allocation5 + $0x28] sm:$0xff]  ;;  %v77_v34 = vld [vmem:[#allocation5 + $0x20] sm:$0xff]  ;;  %v454_v37 = vld [vmem:[#allocation8 + $0x70] sm:$0xff] }
  0x55   :  { %232 = vmatpush1.msra.mxu0 %v73_v63  ;;  %303 = vmatpush1.msra.mxu1 %v75_v1  ;;  %v455_v35 = vld [vmem:[#allocation8 + $0x78] sm:$0xff]  ;;  %v549_v38 = vld [vmem:[#allocation8 + $0xf0] sm:$0xff]  ;;  %v453_v39 = vld [vmem:[#allocation8 + $0x68] sm:$0xff] }
  0x56   :  { %266 = vmatmul.mubr.f32.vlgmr.msra.gmra.mxu0 %v1211_v2  ;;  %337 = vmatmul.mubr.f32.vlgmr.msra.gmra.mxu1 %v1211_v2  ;;  %v550_v36 = vld [vmem:[#allocation8 + $0xf8] sm:$0xff]  ;;  %v548_v40 = vld [vmem:[#allocation8 + $0xe8] sm:$0xff]  ;;  %v452_v41 = vld [vmem:[#allocation8 + $0x60] sm:$0xff] }
  0x57   :  { %343 = vmatprep.subr.mxu0 %v168_v3  ;;  %407 = vmatprep.mubr.f32.mxu0 %v1164_v0  ;;  %v547_v42 = vld [vmem:[#allocation8 + $0xe0] sm:$0xff]  ;;  %v451_v43 = vld [vmem:[#allocation8 + $0x58] sm:$0xff]  ;;  %v450_v45 = vld [vmem:[#allocation8 + $0x50] sm:$0xff] }
  0x58   :  { %344 = vmatpush1.msra.mxu0 %v167_v4  ;;  %887 = vmatprep.subr.mxu1 %v1164_v0  ;;  %v546_v44 = vld [vmem:[#allocation8 + $0xd8] sm:$0xff]  ;;  %v545_v46 = vld [vmem:[#allocation8 + $0xd0] sm:$0xff]  ;;  %v449_v47 = vld [vmem:[#allocation8 + $0x48] sm:$0xff]  ;;  %v171_v4 = vlaneseq }
  0x59   :  { %345 = vmatprep.subr.mxu0 %v162_v5  ;;  %888 = vmatpush3.msra.mxu1 %v455_v35  ;;  %v544_v48 = vld [vmem:[#allocation8 + $0xc8] sm:$0xff]  ;;  %v448_v49 = vld [vmem:[#allocation8 + $0x40] sm:$0xff]  ;;  %v447_v51 = vld [vmem:[#allocation8 + $0x38] sm:$0xff] }
  0x5a   :  { %346 = vmatpush1.msra.mxu0 %v161_v6  ;;  %889 = vmatprep.subr.mxu1 %v1164_v0  ;;  %v543_v50 = vld [vmem:[#allocation8 + $0xc0] sm:$0xff]  ;;  %v542_v52 = vld [vmem:[#allocation8 + $0xb8] sm:$0xff]  ;;  %v446_v53 = vld [vmem:[#allocation8 + $0x30] sm:$0xff]  ;;  %v172_v5 = vshrl.u32 %v171_v4, 7 }
  0x5b   :  { %347 = vmatprep.subr.mxu0 %v156_v7  ;;  %890 = vmatpush3.msra.mxu1 %v454_v37  ;;  %v541_v54 = vld [vmem:[#allocation8 + $0xb0] sm:$0xff]  ;;  %v445_v55 = vld [vmem:[#allocation8 + $0x28] sm:$0xff]  ;;  %v444_v57 = vld [vmem:[#allocation8 + $0x20] sm:$0xff] }
  0x5c   :  { %348 = vmatpush1.msra.mxu0 %v155_v8  ;;  %891 = vmatprep.subr.mxu1 %v1164_v0  ;;  %v540_v56 = vld [vmem:[#allocation8 + $0xa8] sm:$0xff]  ;;  %v539_v58 = vld [vmem:[#allocation8 + $0xa0] sm:$0xff]  ;;  %v443_v59 = vld [vmem:[#allocation8 + $0x18] sm:$0xff]  ;;  %v173_v6 = vsub.s32 0, %v172_v5  ;;  %v181_v7 = vsub.s32 2, %v172_v5  ;;  %v177_v8 = vsub.s32 1, %v172_v5 }
  0x5d   :  { %349 = vmatprep.subr.mxu0 %v150_v9  ;;  %892 = vmatpush3.msra.mxu1 %v453_v39  ;;  %v538_v60 = vld [vmem:[#allocation8 + $0x98] sm:$0xff]  ;;  %v442_v61 = vld [vmem:[#allocation8 + $0x10] sm:$0xff]  ;;  %v441_v63 = vld [vmem:[#allocation8 + $0x8] sm:$0xff] }
  0x5e   :  { %350 = vmatpush1.msra.mxu0 %v149_v10  ;;  %893 = vmatprep.subr.mxu1 %v1164_v0  ;;  %v537_v62 = vld [vmem:[#allocation8 + $0x90] sm:$0xff]  ;;  %v536_v1 = vld [vmem:[#allocation8 + $0x88] sm:$0xff]  ;;  %v535_v3 = vld [vmem:[#allocation8 + $0x80] sm:$0xff] }
  0x5f   :  { %351 = vmatprep.subr.mxu0 %v144_v11  ;;  %894 = vmatpush3.msra.mxu1 %v452_v41  ;;  %v169_v9 = vld [vmem:[#allocation7] sm:$0x3f]  ;;  %v634_v4 = vld [vmem:[#allocation8 + $0x150] sm:$0xff] }
  0x60   :  { %352 = vmatpush1.msra.mxu0 %v143_v12  ;;  %895 = vmatprep.subr.mxu1 %v1164_v0  ;;  %v174_v11 = vrot.slane %v169_v9, %v173_v6  ;;  %v182_v12 = vrot.slane %v169_v9, %v181_v7  ;;  %v633_v6 = vld [vmem:[#allocation8 + $0x148] sm:$0xff] }
  0x61   :  { %353 = vmatprep.subr.mxu0 %v138_v13  ;;  %896 = vmatpush3.msra.mxu1 %v451_v43  ;;  %v178_v13 = vrot.slane %v169_v9, %v177_v8  ;;  %v722_v7 = vld [vmem:[#allocation8 + $0x1c8] sm:$0xff]  ;;  %v632_v8 = vld [vmem:[#allocation8 + $0x140] sm:$0xff] }
  0x62   :  { %354 = vmatpush1.msra.mxu0 %v137_v14  ;;  %897 = vmatprep.subr.mxu1 %v1164_v0 }
  0x63   :  { %355 = vmatprep.subr.mxu0 %v132_v15  ;;  %898 = vmatpush3.msra.mxu1 %v450_v45 }
  0x64   :  { %356 = vmatpush1.msra.mxu0 %v131_v16  ;;  %899 = vmatprep.subr.mxu1 %v1164_v0  ;;  %v185_v16 = vsub.s32 3, %v172_v5 }
  0x65   :  { %357 = vmatprep.subr.mxu0 %v126_v17  ;;  %900 = vmatpush3.msra.mxu1 %v449_v47 }
  0x66   :  { %358 = vmatpush1.msra.mxu0 %v125_v18  ;;  %901 = vmatprep.subr.mxu1 %v1164_v0 }
  0x67   :  { %359 = vmatprep.subr.mxu0 %v120_v19  ;;  %902 = vmatpush3.msra.mxu1 %v448_v49  ;;  %v193_v49 = vsub.s32 5, %v172_v5 }
  0x68   :  { %360 = vmatpush1.msra.mxu0 %v119_v20  ;;  %903 = vmatprep.subr.mxu1 %v1164_v0  ;;  %v186_v20 = vrot.slane %v169_v9, %v185_v16  ;;  %v628_v16 = vld [vmem:[#allocation8 + $0x120] sm:$0xff] }
  0x69   :  { %361 = vmatprep.subr.mxu0 %v114_v21  ;;  %904 = vmatpush3.msra.mxu1 %v447_v51  ;;  %v189_v21 = vsub.s32 4, %v172_v5  ;;  %v723_v5 = vld [vmem:[#allocation8 + $0x1d0] sm:$0xff] }
  0x6a   :  { %362 = vmatpush1.msra.mxu0 %v113_v22  ;;  %905 = vmatprep.subr.mxu1 %v1164_v0 }
  0x6b   :  { %363 = vmatprep.subr.mxu0 %v108_v23  ;;  %906 = vmatpush3.msra.mxu1 %v446_v53 }
  0x6c   :  { %364 = vmatpush1.msra.mxu0 %v107_v24  ;;  %907 = vmatprep.subr.mxu1 %v1164_v0 }
  0x6d   :  { %365 = vmatprep.subr.mxu0 %v102_v25  ;;  %908 = vmatpush3.msra.mxu1 %v445_v55 }
  0x6e   :  { %366 = vmatpush1.msra.mxu0 %v101_v26  ;;  %909 = vmatprep.subr.mxu1 %v1164_v0  ;;  %v190_v26 = vrot.slane %v169_v9, %v189_v21  ;;  %v715_v21 = vld [vmem:[#allocation8 + $0x190] sm:$0xff] }
  0x6f   :  { %367 = vmatprep.subr.mxu0 %v96_v27  ;;  %910 = vmatpush3.msra.mxu1 %v444_v57  ;;  %v639_v57 = vld [vmem:[#allocation8 + $0x178] sm:$0xff] }
  0x70   :  { %368 = vmatpush1.msra.mxu0 %v95_v28  ;;  %911 = vmatprep.subr.mxu1 %v1164_v0 }
  0x71   :  { %369 = vmatprep.subr.mxu0 %v90_v29  ;;  %912 = vmatpush3.msra.mxu1 %v443_v59  ;;  %v638_v59 = vld [vmem:[#allocation8 + $0x170] sm:$0xff] }
  0x72   :  { %370 = vmatpush1.msra.mxu0 %v89_v30  ;;  %913 = vmatprep.subr.mxu1 %v1164_v0 }
  0x73   :  { %371 = vmatprep.subr.mxu0 %v84_v31  ;;  %914 = vmatpush3.msra.mxu1 %v442_v61  ;;  %v637_v61 = vld [vmem:[#allocation8 + $0x168] sm:$0xff] }
  0x74   :  { %372 = vmatpush1.msra.mxu0 %v83_v32  ;;  %915 = vmatprep.subr.mxu1 %v1164_v0 }
  0x75   :  { %373 = vmatprep.subr.mxu0 %v78_v33  ;;  %916 = vmatpush3.msra.mxu1 %v441_v63  ;;  %v636_v63 = vld [vmem:[#allocation8 + $0x160] sm:$0xff] }
  0x76   :  { %374 = vmatpush1.msra.mxu0 %v77_v34  ;;  %917 = vmatprep.subr.mxu1 %v1164_v0 }
  0x77   :  { %408 = vmatmul.mubr.f32.vlgmr.msra.gmra.mxu0 %v1211_v2  ;;  %922 = vmatprep.subr.mxu0 %v1164_v0  ;;  %v440_v2 = vld [vmem:[#allocation8] sm:$0xff] }
  0x78   :  { %923 = vmatpush3.msra.mxu0 %v550_v36  ;;  %918 = vmatpush3.msra.mxu1 %v440_v2  ;;  %v635_v2 = vld [vmem:[#allocation8 + $0x158] sm:$0xff] }
  0x79   :  { %924 = vmatprep.subr.mxu0 %v1164_v0  ;;  %919 = vmatprep.mubr.msk.f32.mxu1 %vm1165_vm0, %v1164_v0 }
  0x7a   :  { %925 = vmatpush3.msra.mxu0 %v549_v38  ;;  %954 = vmatprep.mubr.msk.f32.mxu0 %vm1165_vm0, %v1164_v0 }
  0x7b   :  { %926 = vmatprep.subr.mxu0 %v1164_v0  ;;  %957 = vmatprep.subr.mxu1 %v1164_v0 }
  0x7c   :  { %927 = vmatpush3.msra.mxu0 %v548_v40 }
  0x7d   :  { %928 = vmatprep.subr.mxu0 %v1164_v0 }
  0x7e   :  { %929 = vmatpush3.msra.mxu0 %v547_v42 }
  0x7f   :  { %930 = vmatprep.subr.mxu0 %v1164_v0 }
  0x80   :  { %931 = vmatpush3.msra.mxu0 %v546_v44 }
  0x81   :  { %932 = vmatprep.subr.mxu0 %v1164_v0 }
  0x82   :  { %933 = vmatpush3.msra.mxu0 %v545_v46 }
  0x83   :  { %934 = vmatprep.subr.mxu0 %v1164_v0 }
  0x84   :  { %935 = vmatpush3.msra.mxu0 %v544_v48 }
  0x85   :  { %936 = vmatprep.subr.mxu0 %v1164_v0 }
  0x86   :  { %937 = vmatpush3.msra.mxu0 %v543_v50  ;;  %v194_v50 = vrot.slane %v169_v9, %v193_v49  ;;  %v721_v9 = vld [vmem:[#allocation8 + $0x1c0] sm:$0xff] }
  0x87   :  { %938 = vmatprep.subr.mxu0 %v1164_v0 }
  0x88   :  { %939 = vmatpush3.msra.mxu0 %v542_v52 }
  0x89   :  { %940 = vmatprep.subr.mxu0 %v1164_v0 }
  0x8a   :  { %941 = vmatpush3.msra.mxu0 %v541_v54 }
  0x8b   :  { %942 = vmatprep.subr.mxu0 %v1164_v0 }
  0x8c   :  { %943 = vmatpush3.msra.mxu0 %v540_v56 }
  0x8d   :  { %944 = vmatprep.subr.mxu0 %v1164_v0 }
  0x8e   :  { %945 = vmatpush3.msra.mxu0 %v539_v58  ;;  %v728_v58 = vld [vmem:[#allocation8 + $0x1f8] sm:$0xff] }
  0x8f   :  { %946 = vmatprep.subr.mxu0 %v1164_v0 }
  0x90   :  { %947 = vmatpush3.msra.mxu0 %v538_v60  ;;  %v727_v60 = vld [vmem:[#allocation8 + $0x1f0] sm:$0xff] }
  0x91   :  { %948 = vmatprep.subr.mxu0 %v1164_v0 }
  0x92   :  { %949 = vmatpush3.msra.mxu0 %v537_v62  ;;  %v726_v62 = vld [vmem:[#allocation8 + $0x1e8] sm:$0xff] }
  0x93   :  { %950 = vmatprep.subr.mxu0 %v1164_v0 }
  0x94   :  { %951 = vmatpush3.msra.mxu0 %v536_v1  ;;  %v725_v1 = vld [vmem:[#allocation8 + $0x1e0] sm:$0xff] }
  0x95   :  { %952 = vmatprep.subr.mxu0 %v1164_v0 }
  0x96   :  { %953 = vmatpush3.msra.mxu0 %v535_v3  ;;  %v724_v3 = vld [vmem:[#allocation8 + $0x1d8] sm:$0xff] }
  0x97   :  { %992 = vmatprep.subr.mxu0 %v1164_v0 }
 0x116   :  { %v267_v10 = vpop.f32.mrf.mxu0  ;;  %v338_v14 = vpop.f32.mrf.mxu1 }
 0x117   :  { %v268_v17 = vadd.f32 %v267_v10, %v174_v11  ;;  %v339_v18 = vadd.f32 %v338_v14, %v182_v12  ;;  %v631_v10 = vld [vmem:[#allocation8 + $0x138] sm:$0xff]  ;;  %v630_v12 = vld [vmem:[#allocation8 + $0x130] sm:$0xff]  ;;  %v629_v14 = vld [vmem:[#allocation8 + $0x128] sm:$0xff] }
 0x118   :  { %v269_v15 = vpop.f32.mrf.mxu0  ;;  %v340_v22 = vpop.f32.mrf.mxu1  ;;  %v720_v11 = vld [vmem:[#allocation8 + $0x1b8] sm:$0xff] }
 0x119   :  { %v270_v19 = vadd.f32 %v269_v15, %v178_v13  ;;  %v415_v23 = vmul.f32 %v339_v18, %v268_v17  ;;  %v341_v25 = vadd.f32 %v340_v22, %v186_v20  ;;  %v719_v13 = vld [vmem:[#allocation8 + $0x1b0] sm:$0xff]  ;;  %v718_v15 = vld [vmem:[#allocation8 + $0x1a8] sm:$0xff]  ;;  %v627_v18 = vld [vmem:[#allocation8 + $0x118] sm:$0xff] }
 0x11a   :  { %v626_v20 = vld [vmem:[#allocation8 + $0x110] sm:$0xff]  ;;  %v625_v22 = vld [vmem:[#allocation8 + $0x108] sm:$0xff] }
 0x11b   :  { %v414_v24 = vmul.f32 %v270_v19, %v268_v17  ;;  %v416_v29 = vmul.f32 %v341_v25, %v268_v17  ;;  %v716_v19 = vld [vmem:[#allocation8 + $0x198] sm:$0xff]  ;;  %v713_v25 = vld [vmem:[#allocation8 + $0x180] sm:$0xff] }
 0x11d   :  { %v418_v27 = vmax.f32 %v414_v24, %v415_v23 }
 0x11f   :  { %v419_v31 = vmax.f32 %v418_v27, %v416_v29 }
 0x137   :  { %v409_v28 = vpop.f32.mrf.mxu0 }
 0x138   :  { %v410_v30 = vadd.f32 %v409_v28, %v190_v26 }
 0x139   :  { %v411_v51 = vpop.f32.mrf.mxu0 }
 0x13a   :  { %v417_v32 = vmul.f32 %v410_v30, %v268_v17  ;;  %v412_v52 = vadd.f32 %v411_v51, %v194_v50  ;;  %v717_v17 = vld [vmem:[#allocation8 + $0x1a0] sm:$0xff] }
 0x13c   :  { %v420_v33 = vmax.f32 %v419_v31, %v417_v32 }
 0x13e   :  { %v421_v34 = vsub.f32 %v414_v24, %v420_v33  ;;  %v424_v35 = vsub.f32 %v415_v23, %v420_v33  ;;  %v428_v36 = vsub.f32 %v416_v29, %v420_v33  ;;  %v432_v37 = vsub.f32 %v417_v32, %v420_v33  ;;  %v714_v23 = vld [vmem:[#allocation8 + $0x188] sm:$0xff]  ;;  %v624_v24 = vld [vmem:[#allocation8 + $0x100] sm:$0xff]  ;;  %v818_v32 = vld [vmem:[%s1313_s4] ss:$0 sm:$0xff] }
 0x140   :  { %v422_v38 = vmul.f32 1.442695, %v421_v34  ;;  %v425_v39 = vmul.f32 1.442695, %v424_v35  ;;  %v429_v40 = vmul.f32 1.442695, %v428_v36 }
 0x141   :  { %v433_v41 = vmul.f32 1.442695, %v432_v37 }
 0x142   :  { %1038 = vpow2.f32 %v422_v38 }
 0x143   :  { %1040 = vpow2.f32 %v425_v39 }
 0x144   :  { %1042 = vpow2.f32 %v429_v40 }
 0x145   :  { %1044 = vpow2.f32 %v433_v41 }
 0x14f   :  { %v1039_v42 = vpop.eup %1038 }
 0x150   :  { %v1041_v43 = vpop.eup %1040 }
 0x151   :  { %v427_v44 = vadd.f32 %v1041_v43, %v1039_v42  ;;  %v1255_v45 = vpop.eup %1042 }
 0x152   :  { %v1258_v47 = vpop.eup %1044 }
 0x153   :  { %v431_v46 = vadd.f32 %v1255_v45, %v427_v44 }
 0x155   :  { %v435_v48 = vadd.f32 %v1258_v47, %v431_v46 }
 0x157   :  { %1046 = vrcp.f32 %v435_v48 }
 0x164   :  { %v1047_v53 = vpop.eup %1046 }
 0x165   :  { %v1261_v54 = vmul.f32 %v1047_v53, %v412_v52 }
 0x167   :  { %v439_v55 = vmul.f32 %v1039_v42, %v1261_v54  ;;  %v533_v56 = vmul.f32 %v1041_v43, %v1261_v54  ;;  %v622_v26 = vmul.f32 %v1255_v45, %v1261_v54  ;;  %v711_v27 = vmul.f32 %v1258_v47, %v1261_v54 }
 0x169   :  { %920 = vmatmul.mubr.f32.vlgmr.msra.gmra.mxu1 %v439_v55  ;;  %955 = vmatmul.mubr.f32.vlgmr.msra.gmra.mxu0 %v533_v56 }
 0x16a   :  { %958 = vmatpush3.msra.mxu1 %v639_v57  ;;  %993 = vmatpush3.msra.mxu0 %v728_v58 }
 0x16b   :  { %959 = vmatprep.subr.mxu1 %v1164_v0  ;;  %994 = vmatprep.subr.mxu0 %v1164_v0 }
 0x16c   :  { %960 = vmatpush3.msra.mxu1 %v638_v59  ;;  %995 = vmatpush3.msra.mxu0 %v727_v60 }
 0x16d   :  { %961 = vmatprep.subr.mxu1 %v1164_v0  ;;  %996 = vmatprep.subr.mxu0 %v1164_v0 }
 0x16e   :  { %962 = vmatpush3.msra.mxu1 %v637_v61  ;;  %997 = vmatpush3.msra.mxu0 %v726_v62 }
 0x16f   :  { %963 = vmatprep.subr.mxu1 %v1164_v0  ;;  %998 = vmatprep.subr.mxu0 %v1164_v0 }
 0x170   :  { %964 = vmatpush3.msra.mxu1 %v636_v63  ;;  %999 = vmatpush3.msra.mxu0 %v725_v1 }
 0x171   :  { %965 = vmatprep.subr.mxu1 %v1164_v0  ;;  %1000 = vmatprep.subr.mxu0 %v1164_v0 }
 0x172   :  { %966 = vmatpush3.msra.mxu1 %v635_v2  ;;  %1001 = vmatpush3.msra.mxu0 %v724_v3 }
 0x173   :  { %967 = vmatprep.subr.mxu1 %v1164_v0  ;;  %1002 = vmatprep.subr.mxu0 %v1164_v0 }
 0x174   :  { %968 = vmatpush3.msra.mxu1 %v634_v4  ;;  %1003 = vmatpush3.msra.mxu0 %v723_v5 }
 0x175   :  { %969 = vmatprep.subr.mxu1 %v1164_v0  ;;  %1004 = vmatprep.subr.mxu0 %v1164_v0 }
 0x176   :  { %970 = vmatpush3.msra.mxu1 %v633_v6  ;;  %1005 = vmatpush3.msra.mxu0 %v722_v7 }
 0x177   :  { %971 = vmatprep.subr.mxu1 %v1164_v0  ;;  %1006 = vmatprep.subr.mxu0 %v1164_v0 }
 0x178   :  { %972 = vmatpush3.msra.mxu1 %v632_v8  ;;  %1007 = vmatpush3.msra.mxu0 %v721_v9 }
 0x179   :  { %973 = vmatprep.subr.mxu1 %v1164_v0  ;;  %1008 = vmatprep.subr.mxu0 %v1164_v0 }
 0x17a   :  { %974 = vmatpush3.msra.mxu1 %v631_v10  ;;  %1009 = vmatpush3.msra.mxu0 %v720_v11 }
 0x17b   :  { %975 = vmatprep.subr.mxu1 %v1164_v0  ;;  %1010 = vmatprep.subr.mxu0 %v1164_v0 }
 0x17c   :  { %976 = vmatpush3.msra.mxu1 %v630_v12  ;;  %1011 = vmatpush3.msra.mxu0 %v719_v13 }
 0x17d   :  { %977 = vmatprep.subr.mxu1 %v1164_v0  ;;  %1012 = vmatprep.subr.mxu0 %v1164_v0 }
 0x17e   :  { %978 = vmatpush3.msra.mxu1 %v629_v14  ;;  %1013 = vmatpush3.msra.mxu0 %v718_v15 }
 0x17f   :  { %979 = vmatprep.subr.mxu1 %v1164_v0  ;;  %1014 = vmatprep.subr.mxu0 %v1164_v0 }
 0x180   :  { %980 = vmatpush3.msra.mxu1 %v628_v16  ;;  %1015 = vmatpush3.msra.mxu0 %v717_v17 }
 0x181   :  { %981 = vmatprep.subr.mxu1 %v1164_v0  ;;  %1016 = vmatprep.subr.mxu0 %v1164_v0 }
 0x182   :  { %982 = vmatpush3.msra.mxu1 %v627_v18  ;;  %1017 = vmatpush3.msra.mxu0 %v716_v19 }
 0x183   :  { %983 = vmatprep.subr.mxu1 %v1164_v0  ;;  %1018 = vmatprep.subr.mxu0 %v1164_v0 }
 0x184   :  { %984 = vmatpush3.msra.mxu1 %v626_v20  ;;  %1019 = vmatpush3.msra.mxu0 %v715_v21 }
 0x185   :  { %985 = vmatprep.subr.mxu1 %v1164_v0  ;;  %1020 = vmatprep.subr.mxu0 %v1164_v0 }
 0x186   :  { %986 = vmatpush3.msra.mxu1 %v625_v22  ;;  %1021 = vmatpush3.msra.mxu0 %v714_v23 }
 0x187   :  { %987 = vmatprep.subr.mxu1 %v1164_v0  ;;  %1022 = vmatprep.subr.mxu0 %v1164_v0 }
 0x188   :  { %988 = vmatpush3.msra.mxu1 %v624_v24  ;;  %989 = vmatprep.mubr.msk.f32.mxu1 %vm1165_vm0, %v1164_v0 }
 0x189   :  { %1023 = vmatpush3.msra.mxu0 %v713_v25  ;;  %1024 = vmatprep.mubr.msk.f32.mxu0 %vm1165_vm0, %v1164_v0 }
 0x18a   :  { %990 = vmatmul.mubr.f32.vlgmr.msra.gmra.mxu1 %v622_v26  ;;  %1025 = vmatmul.mubr.f32.vlgmr.msra.gmra.mxu0 %v711_v27 }
 0x229   :  { %v522_v28 = vpop.f32.mrf.mxu1  ;;  %v617_v29 = vpop.f32.mrf.mxu0 }
 0x22a   :  { %v532_v33 = vadd.f32 %v818_v32, %v522_v28 }
 0x22b   :  { %v921_v30 = vpop.f32.mrf.mxu1  ;;  %v956_v31 = vpop.f32.mrf.mxu0 }
 0x22c   :  { %v621_v34 = vadd.f32 %v617_v29, %v532_v33 }
 0x24a   :  { %v706_v35 = vpop.f32.mrf.mxu1  ;;  %v795_v36 = vpop.f32.mrf.mxu0 }
 0x24b   :  { %v710_v37 = vadd.f32 %v706_v35, %v621_v34 }
 0x24c   :  { %v991_v38 = vpop.f32.mrf.mxu1  ;;  %v1026_v39 = vpop.f32.mrf.mxu0 }
 0x24d   :  { %v799_v0 = vadd.f32 %v795_v36, %v710_v37 }
 0x24f   :  { %800 = vst [vmem:[#allocation10] sm:$0xff] %v799_v0 }
 0x250   :  { %1139 = shalt.err (!%p1136_p10)
}
 0x251   :  { %810 = dma.vmem_to_hbm [thread:$0]  %s808_s16, 128, %s1314_s5, [#allocation4]  }
 0x252   :  { %1154 = dma.done.wait [#allocation4], 128  }
 0x253   :  { %1155 = vsyncadd [#allocation4], 4294967168 }
 0x254   :  { %814 = vsyncpa [#allocation3], 1 }
 0x255   :  { %815 = vsyncpa [#allocation6], 1 }
 0x256   :  { %816 = vsyncpa [#allocation9], 1 }
 0x257   :  { %817 = vsyncpa [#allocation4], 1 }

</bundles_post_ra>
